<compile_context>
chip_gen: v5e
topology: v5e:2x2
jax: 0.10.0
libtpu: 0.0.40
codegen_flags: <defaults>
</compile_context>

<pallas_src>
import jax
import jax.numpy as jnp
from jax.experimental import pallas as pl
from jax.experimental.pallas import tpu as pltpu


# -----------------------------------------------------------------------------
# Kernel: one grid step == one graph (leading batch dim squeezed by BlockSpec).
# -----------------------------------------------------------------------------
def gib_kernel(a_ref, x_ref, w1_ref, b1_ref, w2_ref, b2_ref,
               w3_ref, b3_ref, w4_ref, b4_ref,
               assign_ref, pen_ref):
    a = a_ref[...]                       # [N, N] bf16 normalized adjacency
    x = x_ref[...]                       # [N, F] bf16 node features

    # --- GCNConv 1: relu( A_hat @ (X W1) + b1 ) ------------------------------
    h = jnp.dot(x, w1_ref[...], preferred_element_type=jnp.float32)
    h = jnp.dot(a, h.astype(jnp.bfloat16), preferred_element_type=jnp.float32)
    h = jnp.maximum(h + b1_ref[...], 0.0)

    # --- GCNConv 2: A_hat @ (H W2) + b2   (no relu) --------------------------
    h = jnp.dot(h.astype(jnp.bfloat16), w2_ref[...],
                preferred_element_type=jnp.float32)
    h = jnp.dot(a, h.astype(jnp.bfloat16),
                preferred_element_type=jnp.float32) + b2_ref[...]

    # --- fully_connected_1 + tanh (f32 elementwise path) ---------------------
    z = jnp.tanh(jnp.dot(h.astype(jnp.bfloat16), w3_ref[...],
                         preferred_element_type=jnp.float32) + b3_ref[...])

    # --- fully_connected_2 + softmax over dim=1 -------------------------------
    logits = jnp.dot(z.astype(jnp.bfloat16), w4_ref[...],
                     preferred_element_type=jnp.float32) + b4_ref[...]
    m = jnp.max(logits, axis=1, keepdims=True)
    e = jnp.exp(logits - m)
    inv = pl.reciprocal(jnp.sum(e, axis=1, keepdims=True), approx=True)
    assign = e * inv
    assign_ref[...] = assign

    # --- pos_penalty = assignment.var()  (unbiased, over all elements) -------
    n_elems = assign.shape[0] * assign.shape[1]
    mean = jnp.sum(assign) / n_elems
    var = jnp.sum((assign - mean) ** 2) / (n_elems - 1)
    pen_ref[...] = jnp.reshape(var, (1, 1))


# -----------------------------------------------------------------------------
# Plain-JAX glue: dense normalized GCN propagation matrix (built directly in
# propagation orientation; no A.T materialization).
# -----------------------------------------------------------------------------
def build_norm_adj(edge_index, num_nodes):
    """P[i, j] = d_i^{-1/2} d_j^{-1/2} A[j, i] with remaining self loops.

    Binary adjacency (.set): duplicate edges collapse to weight 1 (matches the
    previous revision; PyG would scatter-add duplicates).
    """
    src, dst = edge_index[0], edge_index[1]
    # p[i, j] = 1  iff  edge j -> i  (message from j to i)
    p = jnp.zeros((num_nodes, num_nodes), jnp.float32).at[dst, src].set(1.0)
    diag = jnp.arange(num_nodes)
    p = p.at[diag, diag].set(1.0)                       # remaining self loops
    deg = jnp.sum(p, axis=1)                            # in-degree incl. self loop
    dis = jnp.where(deg > 0, 1.0 / jnp.sqrt(deg), 0.0)
    return dis[:, None] * p * dis[None, :]


def gib_forward(edge_index, x, params):
    """Batched GIB forward.

    edge_index : [B, 2, E] int32 per-graph COO edge list
    x          : [B, N, F] float32 per-graph node features
    returns (assignment [B, N, D2] f32, pos_penalty [B] f32)
    """
    w1, b1, w2, b2, w3, b3, w4, b4 = params
    bsz, n, f = x.shape
    g1, g2 = w1.shape[1], w2.shape[1]
    d1, d2 = w3.shape[1], w4.shape[1]

    a_hat = jax.vmap(lambda e: build_norm_adj(e, n))(edge_index)

    # bf16 for everything feeding the MXU; biases stay f32 (added to f32 acc).
    a_hat = a_hat.astype(jnp.bfloat16)
    xb = x.astype(jnp.bfloat16)
    w1b, w2b, w3b, w4b = (w.astype(jnp.bfloat16) for w in (w1, w2, w3, w4))

    flops_per_graph = 2 * n * (f * g1 + n * g1 + g1 * g2 + n * g2
                               + g2 * d1 + d1 * d2)
    cost = pl.CostEstimate(
        flops=int(bsz * flops_per_graph),
        transcendentals=int(bsz * n * (d1 + 2 * d2)),   # tanh + exp + recip
        bytes_accessed=int(
            a_hat.size * 2 + xb.size * 2
            + sum(w.size * 2 for w in (w1b, w2b, w3b, w4b))
            + sum(b.size * 4 for b in (b1, b2, b3, b4))
            + bsz * (n * d2 + 1) * 4),
    )

    def shared(arr):
        zeros = (0,) * arr.ndim
        return pl.BlockSpec(arr.shape, lambda b, _z=zeros: _z)

    # TODO(synk): if N grows, row-tile the A_hat matmuls (grid over row blocks,
    # reduction axis last) and size tiles per-generation VMEM (v7x: 64 MiB).
    kernel = pl.pallas_call(
        gib_kernel,
        grid=(bsz,),
        in_specs=[
            pl.BlockSpec((None, n, n), lambda b: (b, 0, 0)),   # A_hat[b]
            pl.BlockSpec((None, n, f), lambda b: (b, 0, 0)),   # X[b]
            shared(w1b), shared(b1), shared(w2b), shared(b2),
            shared(w3b), shared(b3), shared(w4b), shared(b4),
        ],
        out_specs=(
            pl.BlockSpec((None, n, d2), lambda b: (b, 0, 0)),   # assignment[b]
            pl.BlockSpec((None, 1, 1), lambda b: (b, 0, 0)),    # pos_penalty[b]
        ),
        out_shape=(
            jax.ShapeDtypeStruct((bsz, n, d2), jnp.float32),
            jax.ShapeDtypeStruct((bsz, 1, 1), jnp.float32),
        ),
        compiler_params=pltpu.CompilerParams(
            dimension_semantics=("parallel",)),
        cost_estimate=cost,
    )
    assignment, pen = kernel(a_hat, xb, w1b, b1, w2b, b2, w3b, b3, w4b, b4)
    # "subgraph.attr = assignment" is represented by returning assignment.
    return assignment, pen[:, 0, 0]


def init_params(key, num_feat, gcn1, gcn2, dense1, dense2):
    ks = jax.random.split(key, 8)

    def glorot(k, shape):
        lim = jnp.sqrt(6.0 / (shape[0] + shape[1]))
        return jax.random.uniform(k, shape, jnp.float32, -lim, lim)

    w1 = glorot(ks[0], (num_feat, gcn1)); b1 = jnp.zeros((1, gcn1), jnp.float32)
    w2 = glorot(ks[1], (gcn1, gcn2));     b2 = jnp.zeros((1, gcn2), jnp.float32)
    w3 = glorot(ks[2], (gcn2, dense1))
    b3 = jax.random.uniform(ks[3], (1, dense1), jnp.float32, -0.1, 0.1)
    w4 = glorot(ks[4], (dense1, dense2))
    b4 = jax.random.uniform(ks[5], (1, dense2), jnp.float32, -0.1, 0.1)
    return (w1, b1, w2, b2, w3, b3, w4, b4)


if __name__ == "__main__":
    key = jax.random.PRNGKey(0)
    B = 8                        # graphs per batch (grid axis, "parallel")
    N = 16                       # nodes per graph
    NUM_FEATURES = 32
    FIRST_GCN = 16
    SECOND_GCN = 16
    FIRST_DENSE = 8
    SECOND_DENSE = 2

    k_x, k_p = jax.random.split(key)
    x = jax.random.normal(k_x, (B, N, NUM_FEATURES), jnp.float32)

    # undirected ring graph (shared topology; per-graph features differ)
    idx = jnp.arange(N)
    src = jnp.concatenate([idx, (idx + 1) % N])
    dst = jnp.concatenate([(idx + 1) % N, idx])
    edge_index = jnp.broadcast_to(
        jnp.stack([src, dst]).astype(jnp.int32)[None], (B, 2, 2 * N))

    params = init_params(k_p, NUM_FEATURES, FIRST_GCN, SECOND_GCN,
                         FIRST_DENSE, SECOND_DENSE)

    fwd = jax.jit(gib_forward)
    assignment, pos_penalty = fwd(edge_index, x, params)
    jax.block_until_ready((assignment, pos_penalty))

    assert assignment.shape == (B, N, SECOND_DENSE)
    assert pos_penalty.shape == (B,)
    # softmax rows sum to 1 (approx EUP reciprocal: ~1e-4 relative error)
    assert jnp.allclose(jnp.sum(assignment, axis=-1), 1.0, atol=5e-3)
    assert bool(jnp.all(jnp.isfinite(assignment)))
    assert bool(jnp.all(pos_penalty >= 0.0))
    print("KERNEL_OK")
</pallas_src>

<mosaic_0001>
module attributes {stable_mosaic.version = 11 : i64} {
  func.func @gib_kernel(%arg0: i32, %arg1: memref<1x16x16xbf16, #tpu.memory_space<vmem>>, %arg2: memref<1x16x32xbf16, #tpu.memory_space<vmem>>, %arg3: memref<32x16xbf16, #tpu.memory_space<vmem>>, %arg4: memref<1x16xf32, #tpu.memory_space<vmem>>, %arg5: memref<16x16xbf16, #tpu.memory_space<vmem>>, %arg6: memref<1x16xf32, #tpu.memory_space<vmem>>, %arg7: memref<16x8xbf16, #tpu.memory_space<vmem>>, %arg8: memref<1x8xf32, #tpu.memory_space<vmem>>, %arg9: memref<8x2xbf16, #tpu.memory_space<vmem>>, %arg10: memref<1x2xf32, #tpu.memory_space<vmem>>, %arg11: memref<1x16x2xf32, #tpu.memory_space<vmem>>, %arg12: memref<1x1x1xf32, #tpu.memory_space<vmem>>) attributes {dimension_semantics = [#tpu.dimension_semantics<parallel>], iteration_bounds = array<i64: 8>, scalar_prefetch = 0 : i64, scratch_operands = 0 : i64, tpu.core_type = #tpu.core_type<tc>, window_params = [{transform_indices = @transform_0, window_bounds = array<i64: 1, 16, 16>}, {transform_indices = @transform_1, window_bounds = array<i64: 1, 16, 32>}, {pipeline_mode = #tpu.pipeline_mode<synchronous>, transform_indices = @transform_2, window_bounds = array<i64: 32, 16>}, {pipeline_mode = #tpu.pipeline_mode<synchronous>, transform_indices = @transform_3, window_bounds = array<i64: 1, 16>}, {pipeline_mode = #tpu.pipeline_mode<synchronous>, transform_indices = @transform_4, window_bounds = array<i64: 16, 16>}, {pipeline_mode = #tpu.pipeline_mode<synchronous>, transform_indices = @transform_5, window_bounds = array<i64: 1, 16>}, {pipeline_mode = #tpu.pipeline_mode<synchronous>, transform_indices = @transform_6, window_bounds = array<i64: 16, 8>}, {pipeline_mode = #tpu.pipeline_mode<synchronous>, transform_indices = @transform_7, window_bounds = array<i64: 1, 8>}, {pipeline_mode = #tpu.pipeline_mode<synchronous>, transform_indices = @transform_8, window_bounds = array<i64: 8, 2>}, {pipeline_mode = #tpu.pipeline_mode<synchronous>, transform_indices = @transform_9, window_bounds = array<i64: 1, 2>}, {transform_indices = @transform_10, window_bounds = array<i64: 1, 16, 2>}, {transform_indices = @transform_11, window_bounds = array<i64: 1, 1, 1>}]} {
    %c0 = arith.constant 0 : index
    %c0_0 = arith.constant 0 : index
    %c0_1 = arith.constant 0 : index
    %0 = vector.load %arg1[%c0, %c0_0, %c0_1] : memref<1x16x16xbf16, #tpu.memory_space<vmem>>, vector<1x16x16xbf16>
    %1 = vector.shape_cast %0 : vector<1x16x16xbf16> to vector<16x16xbf16>
    %c0_2 = arith.constant 0 : index
    %c0_3 = arith.constant 0 : index
    %c0_4 = arith.constant 0 : index
    %2 = vector.load %arg2[%c0_2, %c0_3, %c0_4] : memref<1x16x32xbf16, #tpu.memory_space<vmem>>, vector<1x16x32xbf16>
    %3 = vector.shape_cast %2 : vector<1x16x32xbf16> to vector<16x32xbf16>
    %c0_5 = arith.constant 0 : index
    %c0_6 = arith.constant 0 : index
    %4 = vector.load %arg3[%c0_5, %c0_6] : memref<32x16xbf16, #tpu.memory_space<vmem>>, vector<32x16xbf16>
    %cst = arith.constant dense<0.000000e+00> : vector<16x16xf32>
    %5 = tpu.matmul %3, %4, %cst {dimension_numbers = #tpu.dot_dimension_numbers<[1], [0], [0], [1], [0, 0, 1, 1], [], []>} : vector<16x32xbf16>, vector<32x16xbf16>, vector<16x16xf32> -> vector<16x16xf32>
    %6 = arith.truncf %5 : vector<16x16xf32> to vector<16x16xbf16>
    %cst_7 = arith.constant dense<0.000000e+00> : vector<16x16xf32>
    %7 = tpu.matmul %1, %6, %cst_7 {dimension_numbers = #tpu.dot_dimension_numbers<[1], [0], [0], [1], [0, 0, 1, 1], [], []>} : vector<16x16xbf16>, vector<16x16xbf16>, vector<16x16xf32> -> vector<16x16xf32>
    %c0_8 = arith.constant 0 : index
    %c0_9 = arith.constant 0 : index
    %8 = vector.load %arg4[%c0_8, %c0_9] : memref<1x16xf32, #tpu.memory_space<vmem>>, vector<1x16xf32>
    %9 = vector.broadcast %8 : vector<1x16xf32> to vector<16x16xf32>
    %10 = arith.addf %7, %9 : vector<16x16xf32>
    %cst_10 = arith.constant 0.000000e+00 : f32
    %11 = vector.broadcast %cst_10 : f32 to vector<16x16xf32>
    %12 = arith.maximumf %10, %11 : vector<16x16xf32>
    %13 = arith.truncf %12 : vector<16x16xf32> to vector<16x16xbf16>
    %c0_11 = arith.constant 0 : index
    %c0_12 = arith.constant 0 : index
    %14 = vector.load %arg5[%c0_11, %c0_12] : memref<16x16xbf16, #tpu.memory_space<vmem>>, vector<16x16xbf16>
    %cst_13 = arith.constant dense<0.000000e+00> : vector<16x16xf32>
    %15 = tpu.matmul %13, %14, %cst_13 {dimension_numbers = #tpu.dot_dimension_numbers<[1], [0], [0], [1], [0, 0, 1, 1], [], []>} : vector<16x16xbf16>, vector<16x16xbf16>, vector<16x16xf32> -> vector<16x16xf32>
    %16 = arith.truncf %15 : vector<16x16xf32> to vector<16x16xbf16>
    %cst_14 = arith.constant dense<0.000000e+00> : vector<16x16xf32>
    %17 = tpu.matmul %1, %16, %cst_14 {dimension_numbers = #tpu.dot_dimension_numbers<[1], [0], [0], [1], [0, 0, 1, 1], [], []>} : vector<16x16xbf16>, vector<16x16xbf16>, vector<16x16xf32> -> vector<16x16xf32>
    %c0_15 = arith.constant 0 : index
    %c0_16 = arith.constant 0 : index
    %18 = vector.load %arg6[%c0_15, %c0_16] : memref<1x16xf32, #tpu.memory_space<vmem>>, vector<1x16xf32>
    %19 = vector.broadcast %18 : vector<1x16xf32> to vector<16x16xf32>
    %20 = arith.addf %17, %19 : vector<16x16xf32>
    %21 = arith.truncf %20 : vector<16x16xf32> to vector<16x16xbf16>
    %c0_17 = arith.constant 0 : index
    %c0_18 = arith.constant 0 : index
    %22 = vector.load %arg7[%c0_17, %c0_18] : memref<16x8xbf16, #tpu.memory_space<vmem>>, vector<16x8xbf16>
    %cst_19 = arith.constant dense<0.000000e+00> : vector<16x8xf32>
    %23 = tpu.matmul %21, %22, %cst_19 {dimension_numbers = #tpu.dot_dimension_numbers<[1], [0], [0], [1], [0, 0, 1, 1], [], []>} : vector<16x16xbf16>, vector<16x8xbf16>, vector<16x8xf32> -> vector<16x8xf32>
    %c0_20 = arith.constant 0 : index
    %c0_21 = arith.constant 0 : index
    %24 = vector.load %arg8[%c0_20, %c0_21] : memref<1x8xf32, #tpu.memory_space<vmem>>, vector<1x8xf32>
    %25 = vector.broadcast %24 : vector<1x8xf32> to vector<16x8xf32>
    %26 = arith.addf %23, %25 : vector<16x8xf32>
    %27 = math.tanh %26 : vector<16x8xf32>
    %28 = arith.truncf %27 : vector<16x8xf32> to vector<16x8xbf16>
    %c0_22 = arith.constant 0 : index
    %c0_23 = arith.constant 0 : index
    %29 = vector.load %arg9[%c0_22, %c0_23] : memref<8x2xbf16, #tpu.memory_space<vmem>>, vector<8x2xbf16>
    %cst_24 = arith.constant dense<0.000000e+00> : vector<16x2xf32>
    %30 = tpu.matmul %28, %29, %cst_24 {dimension_numbers = #tpu.dot_dimension_numbers<[1], [0], [0], [1], [0, 0, 1, 1], [], []>} : vector<16x8xbf16>, vector<8x2xbf16>, vector<16x2xf32> -> vector<16x2xf32>
    %c0_25 = arith.constant 0 : index
    %c0_26 = arith.constant 0 : index
    %31 = vector.load %arg10[%c0_25, %c0_26] : memref<1x2xf32, #tpu.memory_space<vmem>>, vector<1x2xf32>
    %32 = vector.broadcast %31 : vector<1x2xf32> to vector<16x2xf32>
    %33 = arith.addf %30, %32 : vector<16x2xf32>
    %cst_27 = arith.constant dense<0xFF800000> : vector<16xf32>
    %34 = vector.multi_reduction <maximumf>, %33, %cst_27 [1] : vector<16x2xf32> to vector<16xf32>
    %35 = vector.shape_cast %34 : vector<16xf32> to vector<16x1xf32>
    %36 = vector.broadcast %35 : vector<16x1xf32> to vector<16x2xf32>
    %37 = arith.subf %33, %36 : vector<16x2xf32>
    %38 = math.exp %37 : vector<16x2xf32>
    %cst_28 = arith.constant dense<0.000000e+00> : vector<16xf32>
    %39 = vector.multi_reduction <add>, %38, %cst_28 [1] : vector<16x2xf32> to vector<16xf32>
    %40 = vector.shape_cast %39 : vector<16xf32> to vector<16x1xf32>
    %41 = tpu.reciprocal %40 {approx = true} : vector<16x1xf32> -> vector<16x1xf32>
    %42 = vector.broadcast %41 : vector<16x1xf32> to vector<16x2xf32>
    %43 = arith.mulf %38, %42 : vector<16x2xf32>
    %c0_29 = arith.constant 0 : index
    %c0_30 = arith.constant 0 : index
    %c0_31 = arith.constant 0 : index
    %44 = vector.load %arg11[%c0_29, %c0_30, %c0_31] : memref<1x16x2xf32, #tpu.memory_space<vmem>>, vector<1x16x2xf32>
    %45 = vector.shape_cast %44 : vector<1x16x2xf32> to vector<16x2xf32>
    %46 = vector.shape_cast %43 : vector<16x2xf32> to vector<1x16x2xf32>
    tpu.vector_store %arg11[%c0_29, %c0_30, %c0_31], %46 {strides = array<i32>} : memref<1x16x2xf32, #tpu.memory_space<vmem>>, vector<1x16x2xf32>,
    %47 = vector.shape_cast %43 : vector<16x2xf32> to vector<1x16x2xf32>
    %cst_32 = arith.constant dense<0.000000e+00> : vector<1xf32>
    %48 = vector.multi_reduction <add>, %47, %cst_32 [1, 2] : vector<1x16x2xf32> to vector<1xf32>
    %49 = vector.shape_cast %48 : vector<1xf32> to vector<1x1x1xf32>
    %50 = vector.extract %49[0, 0, 0] : f32 from vector<1x1x1xf32>
    %cst_33 = arith.constant 3.200000e+01 : f32
    %51 = arith.divf %50, %cst_33 : f32
    %52 = vector.broadcast %51 : f32 to vector<16x2xf32>
    %53 = arith.subf %43, %52 : vector<16x2xf32>
    %54 = arith.mulf %53, %53 : vector<16x2xf32>
    %55 = vector.shape_cast %54 : vector<16x2xf32> to vector<1x16x2xf32>
    %cst_34 = arith.constant dense<0.000000e+00> : vector<1xf32>
    %56 = vector.multi_reduction <add>, %55, %cst_34 [1, 2] : vector<1x16x2xf32> to vector<1xf32>
    %57 = vector.shape_cast %56 : vector<1xf32> to vector<1x1x1xf32>
    %58 = vector.extract %57[0, 0, 0] : f32 from vector<1x1x1xf32>
    %cst_35 = arith.constant 3.100000e+01 : f32
    %59 = arith.divf %58, %cst_35 : f32
    %60 = vector.broadcast %59 : f32 to vector<1x1xf32>
    %c0_36 = arith.constant 0 : index
    %c0_37 = arith.constant 0 : index
    %c0_38 = arith.constant 0 : index
    %61 = vector.load %arg12[%c0_36, %c0_37, %c0_38] : memref<1x1x1xf32, #tpu.memory_space<vmem>>, vector<1x1x1xf32>
    %62 = vector.shape_cast %61 : vector<1x1x1xf32> to vector<1x1xf32>
    %63 = vector.shape_cast %60 : vector<1x1xf32> to vector<1x1x1xf32>
    tpu.vector_store %arg12[%c0_36, %c0_37, %c0_38], %63 {strides = array<i32>} : memref<1x1x1xf32, #tpu.memory_space<vmem>>, vector<1x1x1xf32>,
    return
  }
  func.func @transform_0(%arg0: i32) -> (i32, i32, i32) {
    %c0_i32 = arith.constant 0 : i32
    %c0_i32_0 = arith.constant 0 : i32
    %c0_i32_1 = arith.constant 0 : i32
    return %arg0, %c0_i32, %c0_i32_0 : i32, i32, i32
  }
  func.func @transform_1(%arg0: i32) -> (i32, i32, i32) {
    %c0_i32 = arith.constant 0 : i32
    %c0_i32_0 = arith.constant 0 : i32
    %c0_i32_1 = arith.constant 0 : i32
    return %arg0, %c0_i32, %c0_i32_0 : i32, i32, i32
  }
  func.func @transform_2(%arg0: i32) -> (i32, i32) {
    %c0_i32 = arith.constant 0 : i32
    %c0_i32_0 = arith.constant 0 : i32
    %c0_i32_1 = arith.constant 0 : i32
    return %c0_i32, %c0_i32_0 : i32, i32
  }
  func.func @transform_3(%arg0: i32) -> (i32, i32) {
    %c0_i32 = arith.constant 0 : i32
    %c0_i32_0 = arith.constant 0 : i32
    %c0_i32_1 = arith.constant 0 : i32
    return %c0_i32, %c0_i32_0 : i32, i32
  }
  func.func @transform_4(%arg0: i32) -> (i32, i32) {
    %c0_i32 = arith.constant 0 : i32
    %c0_i32_0 = arith.constant 0 : i32
    %c0_i32_1 = arith.constant 0 : i32
    return %c0_i32, %c0_i32_0 : i32, i32
  }
  func.func @transform_5(%arg0: i32) -> (i32, i32) {
    %c0_i32 = arith.constant 0 : i32
    %c0_i32_0 = arith.constant 0 : i32
    %c0_i32_1 = arith.constant 0 : i32
    return %c0_i32, %c0_i32_0 : i32, i32
  }
  func.func @transform_6(%arg0: i32) -> (i32, i32) {
    %c0_i32 = arith.constant 0 : i32
    %c0_i32_0 = arith.constant 0 : i32
    %c0_i32_1 = arith.constant 0 : i32
    return %c0_i32, %c0_i32_0 : i32, i32
  }
  func.func @transform_7(%arg0: i32) -> (i32, i32) {
    %c0_i32 = arith.constant 0 : i32
    %c0_i32_0 = arith.constant 0 : i32
    %c0_i32_1 = arith.constant 0 : i32
    return %c0_i32, %c0_i32_0 : i32, i32
  }
  func.func @transform_8(%arg0: i32) -> (i32, i32) {
    %c0_i32 = arith.constant 0 : i32
    %c0_i32_0 = arith.constant 0 : i32
    %c0_i32_1 = arith.constant 0 : i32
    return %c0_i32, %c0_i32_0 : i32, i32
  }
  func.func @transform_9(%arg0: i32) -> (i32, i32) {
    %c0_i32 = arith.constant 0 : i32
    %c0_i32_0 = arith.constant 0 : i32
    %c0_i32_1 = arith.constant 0 : i32
    return %c0_i32, %c0_i32_0 : i32, i32
  }
  func.func @transform_10(%arg0: i32) -> (i32, i32, i32) {
    %c0_i32 = arith.constant 0 : i32
    %c0_i32_0 = arith.constant 0 : i32
    %c0_i32_1 = arith.constant 0 : i32
    return %arg0, %c0_i32, %c0_i32_0 : i32, i32, i32
  }
  func.func @transform_11(%arg0: i32) -> (i32, i32, i32) {
    %c0_i32 = arith.constant 0 : i32
    %c0_i32_0 = arith.constant 0 : i32
    %c0_i32_1 = arith.constant 0 : i32
    return %arg0, %c0_i32, %c0_i32_0 : i32, i32, i32
  }
}

</mosaic_0001>

<bundles_post_ra>
// kernel: gib_forward.1
= control target key start
LH: loop header
LB: loop body
LE: loop exit
PB: predicated region body
PF: predicated region fallthrough
CT: control target
= control target key end

     0   :  { %s922_s17 = smov 0   ;;  %s991_s0 = inlined_call_operand.vmem [shape: bf16[8,16,16], index: 0, kind: input, shape index: {}]   ;;  %s992_s1 = inlined_call_operand.vmem [shape: bf16[8,16,32], index: 1, kind: input, shape index: {}]   ;;  %s993_s2 = inlined_call_operand.vmem [shape: bf16[32,16], index: 2, kind: input, shape index: {}]   ;;  %s994_s3 = inlined_call_operand.vmem [shape: f32[1,16], index: 3, kind: input, shape index: {}]   ;;  %s995_s4 = inlined_call_operand.vmem [shape: bf16[16,16], index: 4, kind: input, shape index: {}]   ;;  %s996_s5 = inlined_call_operand.vmem [shape: f32[1,16], index: 5, kind: input, shape index: {}]   ;;  %s997_s6 = inlined_call_operand.vmem [shape: bf16[16,8], index: 6, kind: input, shape index: {}]   ;;  %s998_s7 = inlined_call_operand.vmem [shape: f32[1,8], index: 7, kind: input, shape index: {}]   ;;  %s999_s8 = inlined_call_operand.vmem [shape: bf16[8,2], index: 8, kind: input, shape index: {}]   ;;  %s1000_s9 = inlined_call_operand.vmem [shape: f32[1,2], index: 9, kind: input, shape index: {}]   ;;  %s1001_s10 = inlined_call_operand.vmem [shape: f32[8,16,2], index: 10, kind: output, shape index: {0}]   ;;  %s1002_s11 = inlined_call_operand.vmem [shape: f32[8,1,1], index: 11, kind: output, shape index: {1}]  }
   0x1 LB: > { %s762_s18 = sadd.s32 4294967295, %s858_s17   ;;  %p766_p0 = scmp.ge.s32.totalorder %s858_s17, 1  ;;  %s858_s17 = sphi %s922_s17, %s22_s17  }
   0x2   : > { %p350_p1 = scmp.lt.s32.totalorder %s858_s17, 9 }
   0x4   : > { %p351_p2 = pnand %p766_p0, %p350_p1 }
   0x5   : > { %p398_p3 = scmp.lt.s32.totalorder (!%p351_p2), %s762_s18, 7 }
   0x6   : > { %354 = sbr.rel (%p351_p2) target bundleno = 1503 (0x5df), region = 60 }
   0xb   : > { %v811_v0 = vld [vmem:[%s993_s2 + $0x8] sm:$0xff]  ;;  %v810_v1 = vld [vmem:[%s993_s2] sm:$0xff]  ;;  %s1004_s18 = smov (!%p398_p3, %s762_s18), 7  ;;  %vm442_vm0 = vcmask 261120   ;;  %vm470_vm1 = vcmask 130048   ;;  %vm577_vm2 = vcmask 1043456  }
   0xc   : > { %452 = vmatpush.bf16.msra.mxu0 %v811_v0  ;;  %s805_s23 = sshll.u32 %s1004_s18, 3  ;;  %v812_v7 = vld [vmem:[%s995_s4] sm:$0xff]  ;;  %vm573_vm3 = vcmask 64512   ;;  %vm595_vm4 = vcmask 15360   ;;  %s807_s27 = sshll.u32 %s1004_s18, 4  ;;  %v860_v62 = vmov 32.0  }
   0xd   : > { %s407_s26 = scalar_lea.vmem %s992_s1, %s805_s23  ;;  %s402_s29 = scalar_lea.vmem %s991_s0, %s805_s23  ;;  %509 = vmatpush.bf16.msra.mxu2 %v812_v7  ;;  %v832_v9 = vld [vmem:[%s994_s3] ss:$0 sm:$0xff]  ;;  %vm668_vm7 = vcmask 0  }
   0xe   : > { %v809_v2 = vld [vmem:[%s407_s26] sm:$0xff]  ;;  %s412_s30 = scalar_lea.vmem %s1001_s10, %s807_s27  ;;  %s415_s21 = scalar_lea.vmem %s1002_s11, %s1004_s18 }
   0xf   : > { %v808_v6 = vld [vmem:[%s402_s29] sm:$0xff] }
  0x10   : > { %453 = vmatpush.bf16.msra.mxu0 %v810_v1  ;;  %v813_v16 = vld [vmem:[%s997_s6] sm:$0xff] }
  0x11   : > { %v833_v21 = vld [vmem:[%s996_s5] ss:$0 sm:$0xff] }
  0x12   : > { %v568_v26 = vld [vmem:[%s999_s8] sm:$0xf] }
  0x13   : > { %785 = vmatmul.msk.bf16.vlgmr.msra.gmra.mxu0 %vm442_vm0, %v809_v2  ;;  %v579_v27 = vsel %vm577_vm2, %v568_v26, 0  ;;  %v834_v29 = vld [vmem:[%s998_s7] ss:$0 sm:$0xff] }
  0x14   : > { %588 = vmatpush.bf16.msrb.mxu2 %v579_v27  ;;  %v835_v36 = vld [vmem:[%s1000_s9] ss:$0 sm:$0xff] }
  0x90   : > { %v455_v3 = vpop.f32.mrf.mxu0 }
  0x98   : > { %v457_v4 = vpop.f32.mrf.mxu0 }
  0x99   : > { %v460_v5 = vpack.c.bf16 %v457_v4, %v455_v3 }
  0x9b   : > { %481 = vmatpush.bf16.msra.mxu1 %v460_v5 }
  0x9e   : > { %790 = vmatmul.msk.bf16.vlgmr.msra.gmra.mxu1 %vm470_vm1, %v808_v6 }
  0x9f   : > { %558 = vmatpush.bf16.msrb.mxu1 %v813_v16 }
 0x11b   : > { %v483_v8 = vpop.f32.mrf.mxu1 }
 0x11c   : > { %v484_v10 = vadd.f32 %v832_v9, %v483_v8 }
 0x11e   : > { %v488_v13 = vmax.f32 %v484_v10, 0.0 }
 0x123   : > { %v485_v11 = vpop.f32.mrf.mxu1 }
 0x124   : > { %v486_v12 = vadd.f32 %v832_v9, %v485_v11 }
 0x126   : > { %v489_v14 = vmax.f32 %v486_v12, 0.0 }
 0x128   : > { %v490_v15 = vpack.c.bf16 %v489_v14, %v488_v13 }
 0x12a   : > { %795 = vmatmul.msk.bf16.vlgmr.msra.gmra.mxu2 %vm470_vm1, %v490_v15 }
 0x1ad   : > { %v511_v17 = vpop.f32.mrf.mxu2 }
 0x1b5   : > { %v513_v18 = vpop.f32.mrf.mxu2 }
 0x1b6   : > { %v516_v19 = vpack.c.bf16 %v513_v18, %v511_v17 }
 0x1b8   : > { %528 = vmatpush.bf16.msra.mxu3 %v516_v19 }
 0x1bb   : > { %796 = vmatmul.msk.bf16.vlgmr.msra.gmra.mxu3 %vm470_vm1, %v808_v6 }
 0x23e   : > { %v530_v20 = vpop.f32.mrf.mxu3 }
 0x23f   : > { %v531_v23 = vadd.f32 %v833_v21, %v530_v20  ;;  %v861_v20 = vmov 31.0  }
 0x246   : > { %v532_v22 = vpop.f32.mrf.mxu3 }
 0x247   : > { %v533_v24 = vadd.f32 %v833_v21, %v532_v22 }
 0x249   : > { %v535_v25 = vpack.c.bf16 %v533_v24, %v531_v23 }
 0x24b   : > { %801 = vmatmul.msk.bf16.vlgmr.msrb.gmra.mxu1 %vm470_vm1, %v535_v25 }
 0x2c8   : > { %v560_v28 = vpop.f32.mrf.mxu1 }
 0x2c9   : > { %v561_v30 = vadd.f32 %v834_v29, %v560_v28 }
 0x2cb   : > { %836 = vtanh.f32 %v561_v30 }
 0x2d0   : > { %v562_v31 = vpop.f32.mrf.mxu1 }
 0x2d1   : > { %v563_v32 = vadd.f32 %v834_v29, %v562_v31  ;;  %v837_v33 = vpop.eup %836 }
 0x2d3   : > { %838 = vtanh.f32 %v563_v32 }
 0x2d9   : > { %v839_v34 = vpop.eup %838 }
 0x2da   : > { %v567_v35 = vpack.c.bf16 %v839_v34, %v837_v33 }
 0x2dc   : > { %802 = vmatmul.msk.bf16.vlgmr.msrb.gmra.mxu2 %vm573_vm3, %v567_v35 }
 0x35f   : > { %v590_v37 = vpop.f32.mrf.mxu2 }
 0x360   : > { %v591_v38 = vadd.f32 %v835_v36, %v590_v37 }
 0x362   : > { %v596_v39 = vsel %vm595_vm4, %v591_v38, -inf }
 0x363   : > { %597 = vmax.xlane.f32.xlu0 %v596_v39 }
 0x367   : > { %v592_v40 = vpop.f32.mrf.mxu2 }
 0x368   : > { %v593_v41 = vadd.f32 %v835_v36, %v592_v40 }
 0x36a   : > { %v599_v42 = vsel %vm595_vm4, %v593_v41, -inf }
 0x36b   : > { %600 = vmax.xlane.f32.xlu0 %v599_v42 }
 0x3d6   : > { %v598_v43 = vpop.xlane.xlu0 %597 }
 0x3d7   : > { %v602_v44 = vsub.f32 %v591_v38, %v598_v43 }
 0x3d9   : > { %v604_v45 = vmul.f32 1.442695, %v602_v44 }
 0x3db   : > { %840 = vpow2.f32 %v604_v45 }
 0x3de   : > { %v601_v46 = vpop.xlane.xlu0 %600 }
 0x3df   : > { %v603_v47 = vsub.f32 %v593_v41, %v601_v46 }
 0x3e1   : > { %v841_v48 = vpop.eup %840  ;;  %v606_v49 = vmul.f32 1.442695, %v603_v47 }
 0x3e2   : > { %v608_v50 = vsel %vm595_vm4, %v841_v48, 0.0 }
 0x3e3   : > { %842 = vpow2.f32 %v606_v49  ;;  %609 = vadd.xlane.f32.xlu1 %v608_v50 }
 0x3e9   : > { %v843_v51 = vpop.eup %842 }
 0x3ea   : > { %v611_v52 = vsel %vm595_vm4, %v843_v51, 0.0 }
 0x3eb   : > { %612 = vadd.xlane.f32.xlu1 %v611_v52 }
 0x456   : > { %v610_v53 = vpop.xlane.xlu1 %609 }
 0x457   : > { %844 = vrcp.f32 %v610_v53 }
 0x45d   : > { %v845_v54 = vpop.eup %844 }
 0x45e   : > { %v613_v55 = vpop.xlane.xlu1 %612  ;;  %v616_v56 = vmul.f32 %v845_v54, %v841_v48 }
 0x45f   : > { %846 = vrcp.f32 %v613_v55 }
 0x460   : > { %618 = vst.msk [vmem:[%s412_s30] sm:$0xff] %vm595_vm4, %v616_v56  ;;  %v620_v59 = vsel %vm595_vm4, %v616_v56, 0.0  ;;  %848 = vrcp.f32 %v860_v62 }
 0x461   : > { %850 = vrcp.f32 %v861_v20 }
 0x465   : > { %v847_v57 = vpop.eup %846 }
 0x466   : > { %v617_v58 = vmul.f32 %v847_v57, %v843_v51  ;;  %v849_v63 = vpop.eup %848 }
 0x467   : > { %v633_v0 = vmul.f32 32.0, %v849_v63  ;;  %vm637_vm5 = vweird.f32 %v849_v63  ;;  %v851_v21 = vpop.eup %850 }
 0x468   : > { %v621_v60 = vsel %vm595_vm4, %v617_v58, 0.0  ;;  %619 = vst.msk [vmem:[%s412_s30 + $0x8] sm:$0xff] %vm595_vm4, %v617_v58  ;;  %v659_v22 = vmul.f32 31.0, %v851_v21  ;;  %vm663_vm6 = vweird.f32 %v851_v21 }
 0x469   : > { %v622_v61 = vadd.f32 %v621_v60, %v620_v59  ;;  %v634_v1 = vsub.f32 1.0, %v633_v0 }
 0x46a   : > { %v660_v23 = vsub.f32 1.0, %v659_v22 }
 0x46b   : > { %623 = vadd.xlane.f32.xlu2 %v622_v61  ;;  %v635_v5 = vmul.f32 %v849_v63, %v634_v1 }
 0x46c   : > { %v661_v27 = vmul.f32 %v851_v21, %v660_v23 }
 0x46d   : > { %v636_v8 = vadd.f32 %v849_v63, %v635_v5 }
 0x46e   : > { %v662_v30 = vadd.f32 %v851_v21, %v661_v27 }
 0x46f   : > { %v638_v11 = vsel %vm637_vm5, %v849_v63, %v636_v8 }
 0x470   : > { %v664_v33 = vsel %vm663_vm6, %v851_v21, %v662_v30 }
 0x4de   : > { %v624_v2 = vpop.xlane.xlu2 %623 }
 0x4df   : > { %v625_v3 = vrot.slane %v624_v2, 4 }
 0x4e1   : > { %v626_v4 = vadd.f32 %v625_v3, %v624_v2 }
 0x4e3   : > { %v627_v6 = vrot.slane %v626_v4, 2 }
 0x4e5   : > { %v628_v7 = vadd.f32 %v627_v6, %v626_v4 }
 0x4e7   : > { %v629_v9 = vrot.slane %v628_v7, 1 }
 0x4e9   : > { %v630_v10 = vadd.f32 %v629_v9, %v628_v7 }
 0x4eb   : > { %814 = vpush %v630_v10 }
 0x4ec   : > { %816 = vpush %v638_v11 }
 0x51c   : > { %s815_s12 = spop %814 }
 0x51d   : > { %s817_s13 = spop %816 }
 0x51e   : > { %s640_s14 = smul.f32 %s817_s13, %s815_s12 }
 0x520   : > { %v641_v12 = vstv %s640_s14 }
 0x521   : > { %v642_v13 = vsub.f32 %v616_v56, %v641_v12  ;;  %v643_v14 = vsub.f32 %v617_v58, %v641_v12 }
 0x523   : > { %v644_v15 = vmul.f32 %v642_v13, %v642_v13  ;;  %v645_v16 = vmul.f32 %v643_v14, %v643_v14 }
 0x525   : > { %v646_v17 = vsel %vm595_vm4, %v644_v15, 0.0  ;;  %v647_v18 = vsel %vm595_vm4, %v645_v16, 0.0 }
 0x526   : > { %v648_v19 = vadd.f32 %v647_v18, %v646_v17 }
 0x528   : > { %649 = vadd.xlane.f32.xlu2 %v648_v19 }
 0x59b   : > { %v650_v24 = vpop.xlane.xlu2 %649 }
 0x59c   : > { %v651_v25 = vrot.slane %v650_v24, 4 }
 0x59e   : > { %v652_v26 = vadd.f32 %v651_v25, %v650_v24 }
 0x5a0   : > { %v653_v28 = vrot.slane %v652_v26, 2 }
 0x5a2   : > { %v654_v29 = vadd.f32 %v653_v28, %v652_v26 }
 0x5a4   : > { %v655_v31 = vrot.slane %v654_v29, 1 }
 0x5a6   : > { %v656_v32 = vadd.f32 %v655_v31, %v654_v29 }
 0x5a8   : > { %818 = vpush %v656_v32 }
 0x5a9   : > { %820 = vpush %v664_v33 }
 0x5d9   : > { %s819_s15 = spop %818 }
 0x5da   : > { %s821_s16 = spop %820 }
 0x5db   : > { %s666_s22 = smul.f32 %s821_s16, %s819_s15 }
 0x5dd   : > { %v667_v34 = vstv %s666_s22 }
 0x5de   : > { %669 = vst.msk [vmem:[%s415_s21] sm:$0x1] %vm668_vm7, %v667_v34 }
 0x5df PF: > { %s22_s17 = sadd.s32 1, %s858_s17  }
 0x5e0   : > { %p19_p4 = scmp.ge.s32.totalorder %s22_s17, 10  }
 0x5e2   :  { %21 = sbr.rel (!%p19_p4) target bundleno = 1 (0x1), region = 105 }

</bundles_post_ra>
